<compile_context>
chip_gen: v5e
topology: v5e:2x2
jax: 0.10.0
libtpu: 0.0.40
codegen_flags: <defaults>
</compile_context>

<pallas_src>
import jax
import jax.numpy as jnp
import numpy as np
from jax import lax
from jax.experimental import pallas as pl
from jax.experimental.pallas import tpu as pltpu

# ---- problem configuration (small, consistent with the module) -------------
N, C, H, W = 2, 4, 16, 16          # input  (NCHW)
OC, KH, KW = 8, 3, 3               # Conv2d(4, 8, kernel_size=3)
OH, OW = H - KH + 1, W - KW + 1    # 14, 14  (valid conv)
PH, PW = OH // 2, OW // 2          # 7, 7    (maxpool 2x2 stride 2)
PP = PH * PW                       # 49      pooled pixels per (n, oc)
GROUPS = 4                         # 2x2 pool-window positions
KH4 = KW4 = 4                      # fused conv+pool receptive field (4x4, stride 2)
CK4 = C * KH4 * KW4                # 64      rows of the fused patch matrix
MROWS = GROUPS * OC                # 32      rows of the expanded weight matrix
LANES = 128                        # lane-dense column axis; N*PP = 98 valid lanes


def encoder_kernel(p_ref, w_ref, b_ref, o_ref):
    """Single invocation, no grid.

    p_ref : (CK4, 128)   bf16  4x4/stride-2 patch matrix; lanes = (n, ph, pw)
    w_ref : (MROWS, CK4) bf16  conv weights expanded per pool position; rows = (g, oc)
    b_ref : (OC, 1)      f32   conv bias
    o_ref : (OC, 128)    f32   pooled + ReLU activations, channel-major, lane-padded
    """
    # One MXU matmul computes the conv output for all pool positions, channels,
    # pooled pixels and batch images at once.  f32 accumulation.
    z = jnp.dot(w_ref[...], p_ref[...], preferred_element_type=jnp.float32)  # (32,128)
    # 2x2 max-pool == max over the four pool-position row blocks (vreg-aligned).
    m = jnp.maximum(jnp.maximum(z[0:OC], z[OC:2 * OC]),
                    jnp.maximum(z[2 * OC:3 * OC], z[3 * OC:4 * OC]))         # (8,128)
    # Bias + ReLU hoisted after the max (exactly equivalent), applied once.
    o_ref[...] = jnp.maximum(m + b_ref[...], 0.0).astype(o_ref.dtype)


@jax.jit
def encoder_forward(x, weight, bias):
    """x: (N, C, H, W) f32, weight: (OC, C, KH, KW), bias: (OC,).

    Returns (N, OC*PH*PW) f32, matching the PyTorch Encoder exactly.
    """
    # Fused conv+pool patch extraction: a 4x4 window at stride 2 contains the
    # 3x3 conv windows of all four pool positions of its pool cell.
    # patches[n, c*16 + r*4 + s, ph, pw] = x[n, c, 2*ph + r, 2*pw + s]
    patches = lax.conv_general_dilated_patches(
        x, filter_shape=(KH4, KW4), window_strides=(2, 2), padding="VALID",
        dimension_numbers=("NCHW", "OIHW", "NCHW"))           # (N, 64, 7, 7)

    # RHS: rows = (c, r, s), lanes = (n, ph, pw) packed into one 128-lane group.
    rhs = jnp.transpose(patches, (1, 0, 2, 3)).reshape(CK4, N * PP)
    rhs = jnp.pad(rhs, ((0, 0), (0, LANES - N * PP))).astype(jnp.bfloat16)

    # LHS: weights expanded per pool position g = (i, j):
    #   wstack[g*OC + oc, c*16 + r*4 + s] = w[oc, c, r - i, s - j]  (0 outside)
    wstack = jnp.stack(
        [jnp.pad(weight, ((0, 0), (0, 0), (i, 1 - i), (j, 1 - j)))
         for i in (0, 1) for j in (0, 1)], axis=0)            # (4, OC, C, 4, 4)
    wstack = wstack.reshape(MROWS, CK4).astype(jnp.bfloat16)
    bcol = bias.reshape(OC, 1).astype(jnp.float32)

    vmem = pl.BlockSpec(memory_space=pltpu.MemorySpace.VMEM)
    slab = pl.pallas_call(
        encoder_kernel,
        out_shape=jax.ShapeDtypeStruct((OC, LANES), jnp.float32),
        # No grid: whole (tiny) arrays live in VMEM for a single invocation.
        in_specs=[vmem, vmem, vmem],
        out_specs=vmem,
        cost_estimate=pl.CostEstimate(
            flops=2 * MROWS * CK4 * LANES,
            transcendentals=0,
            bytes_accessed=(CK4 * LANES * 2 + MROWS * CK4 * 2
                            + OC * 4 + OC * LANES * 4)),
    )(rhs, wstack, bcol)                                      # (OC, 128)

    # lanes -> (n, ph, pw); channel-major flatten == PyTorch's .view(-1, F).
    out = slab[:, :N * PP].reshape(OC, N, PP)
    return jnp.transpose(out, (1, 0, 2)).reshape(N, OC * PP)


def reference_forward(x, weight, bias):
    """Pure-JAX reference replicating the PyTorch forward pass (f32)."""
    conv = lax.conv_general_dilated(
        x, weight, window_strides=(1, 1), padding="VALID",
        dimension_numbers=("NCHW", "OIHW", "NCHW"))
    conv = conv + bias.reshape(1, OC, 1, 1)
    act = jnp.maximum(conv, 0.0)
    pooled = lax.reduce_window(
        act, -jnp.inf, lax.max,
        window_dimensions=(1, 1, 2, 2), window_strides=(1, 1, 2, 2),
        padding="VALID")
    return pooled.reshape(N, OC * PH * PW)


if __name__ == "__main__":
    key = jax.random.PRNGKey(0)
    kx, kw, kb = jax.random.split(key, 3)

    x = jax.random.normal(kx, (N, C, H, W), dtype=jnp.float32)
    # Deterministic synthetic parameters (PyTorch-like uniform init scale).
    fan_in = C * KH * KW
    bound = 1.0 / np.sqrt(fan_in)
    weight = jax.random.uniform(kw, (OC, C, KH, KW), jnp.float32, -bound, bound)
    bias = jax.random.uniform(kb, (OC,), jnp.float32, -bound, bound)

    out = jax.block_until_ready(encoder_forward(x, weight, bias))
    ref = jax.block_until_ready(reference_forward(x, weight, bias))

    assert out.shape == (N, OC * PH * PW), out.shape
    # bf16 matmul operands (f32 accumulation) -> bf16-appropriate tolerance.
    err = np.max(np.abs(np.asarray(out) - np.asarray(ref)))
    assert np.allclose(np.asarray(out), np.asarray(ref), atol=3e-2, rtol=3e-2), err

    print("KERNEL_OK")
</pallas_src>

<mosaic_0001>
module attributes {stable_mosaic.version = 11 : i64} {
  func.func @encoder_kernel(%arg0: memref<64x128xbf16, #tpu.memory_space<vmem>>, %arg1: memref<32x64xbf16, #tpu.memory_space<vmem>>, %arg2: memref<8x1xf32, #tpu.memory_space<vmem>>, %arg3: memref<8x128xf32, #tpu.memory_space<vmem>>) attributes {dimension_semantics = [], scalar_prefetch = 0 : i64, scratch_operands = 0 : i64, tpu.core_type = #tpu.core_type<tc>} {
    %c0 = arith.constant 0 : index
    %c0_0 = arith.constant 0 : index
    %0 = vector.load %arg1[%c0, %c0_0] : memref<32x64xbf16, #tpu.memory_space<vmem>>, vector<32x64xbf16>
    %c0_1 = arith.constant 0 : index
    %c0_2 = arith.constant 0 : index
    %1 = vector.load %arg0[%c0_1, %c0_2] : memref<64x128xbf16, #tpu.memory_space<vmem>>, vector<64x128xbf16>
    %cst = arith.constant dense<0.000000e+00> : vector<32x128xf32>
    %2 = tpu.matmul %0, %1, %cst {dimension_numbers = #tpu.dot_dimension_numbers<[1], [0], [0], [1], [0, 0, 1, 1], [], []>} : vector<32x64xbf16>, vector<64x128xbf16>, vector<32x128xf32> -> vector<32x128xf32>
    %3 = vector.extract_strided_slice %2 {offsets = [0, 0], sizes = [8, 128], strides = [1, 1]} : vector<32x128xf32> to vector<8x128xf32>
    %4 = vector.extract_strided_slice %2 {offsets = [8, 0], sizes = [8, 128], strides = [1, 1]} : vector<32x128xf32> to vector<8x128xf32>
    %5 = arith.maximumf %3, %4 : vector<8x128xf32>
    %6 = vector.extract_strided_slice %2 {offsets = [16, 0], sizes = [8, 128], strides = [1, 1]} : vector<32x128xf32> to vector<8x128xf32>
    %7 = vector.extract_strided_slice %2 {offsets = [24, 0], sizes = [8, 128], strides = [1, 1]} : vector<32x128xf32> to vector<8x128xf32>
    %8 = arith.maximumf %6, %7 : vector<8x128xf32>
    %9 = arith.maximumf %5, %8 : vector<8x128xf32>
    %c0_3 = arith.constant 0 : index
    %c0_4 = arith.constant 0 : index
    %10 = vector.load %arg2[%c0_3, %c0_4] : memref<8x1xf32, #tpu.memory_space<vmem>>, vector<8x1xf32>
    %11 = vector.broadcast %10 : vector<8x1xf32> to vector<8x128xf32>
    %12 = arith.addf %9, %11 : vector<8x128xf32>
    %cst_5 = arith.constant 0.000000e+00 : f32
    %13 = vector.broadcast %cst_5 : f32 to vector<8x128xf32>
    %14 = arith.maximumf %12, %13 : vector<8x128xf32>
    %c0_6 = arith.constant 0 : index
    %c0_7 = arith.constant 0 : index
    %15 = vector.load %arg3[%c0_6, %c0_7] : memref<8x128xf32, #tpu.memory_space<vmem>>, vector<8x128xf32>
    tpu.vector_store %arg3[%c0_6, %c0_7], %14 {strides = array<i32>} : memref<8x128xf32, #tpu.memory_space<vmem>>, vector<8x128xf32>,
    return
  }
}

</mosaic_0001>

<bundles_post_ra>
// kernel: encoder_forward.1
= control target key start
LH: loop header
LB: loop body
LE: loop exit
PB: predicated region body
PF: predicated region fallthrough
CT: control target
= control target key end

     0   :  { %v141_v1 = vmov 0   ;;  %vm61_vm0 = vcmask 523264   ;;  %s186_s0 = inlined_call_operand.vmem [shape: bf16[64,128], index: 0, kind: input, shape index: {}]   ;;  %s187_s2 = inlined_call_operand.vmem [shape: f32[8,1], index: 2, kind: input, shape index: {}]   ;;  %s188_s1 = inlined_call_operand.vmem [shape: bf16[32,64], index: 1, kind: input, shape index: {}]   ;;  %s189_s3 = inlined_call_operand.vmem [shape: f32[8,128], index: 3, kind: output, shape index: {}]  }
   0x1   :  { %v134_v0 = vld [vmem:[%s186_s0 + $0x18] sm:$0xff]  ;;  %140 = vset.pattern.permute.xlu0 %v141_v1  ;;  %v133_v2 = vld [vmem:[%s186_s0 + $0x10] sm:$0xff]  ;;  %v90_v3 = vld [vmem:[%s187_s2] sm:$0xff] }
   0x2   :  { %72 = vmatpush.bf16.msra.mxu0 %v134_v0  ;;  %135 = vmatpush.bf16.msra.mxu1 %v134_v0  ;;  %v132_v4 = vld [vmem:[%s186_s0 + $0x8] sm:$0xff]  ;;  %v131_v5 = vld [vmem:[%s186_s0] sm:$0xff] }
   0x3   :  { %93 = vperm.xlu0 %140, %v90_v3   ;;  %v129_v6 = vld [vmem:[%s188_s1] sm:$0xff]  ;;  %v130_v7 = vld [vmem:[%s188_s1 + $0x8] sm:$0xff] }
   0x6   :  { %73 = vmatpush.bf16.msra.mxu0 %v133_v2  ;;  %136 = vmatpush.bf16.msra.mxu1 %v133_v2 }
   0xa   :  { %74 = vmatpush.bf16.msra.mxu0 %v132_v4  ;;  %137 = vmatpush.bf16.msra.mxu1 %v132_v4 }
   0xe   :  { %75 = vmatpush.bf16.msra.mxu0 %v131_v5  ;;  %138 = vmatpush.bf16.msra.mxu1 %v131_v5 }
  0x11   :  { %127 = vmatmul.msk.bf16.vlgmr.msra.gmra.mxu0 %vm61_vm0, %v129_v6  ;;  %128 = vmatmul.msk.bf16.vlgmr.msra.gmra.mxu1 %vm61_vm0, %v130_v7 }
  0x75   :  { %v94_v14 = vpop.permute.xlu0 %93 }
  0x8e   :  { %v77_v8 = vpop.f32.mrf.mxu0  ;;  %v82_v9 = vpop.f32.mrf.mxu1 }
  0x96   :  { %v79_v10 = vpop.f32.mrf.mxu0  ;;  %v84_v11 = vpop.f32.mrf.mxu1 }
  0x97   :  { %v87_v12 = vmax.f32 %v77_v8, %v79_v10  ;;  %v88_v13 = vmax.f32 %v82_v9, %v84_v11 }
  0x99   :  { %v89_v15 = vmax.f32 %v87_v12, %v88_v13 }
  0x9b   :  { %v96_v16 = vadd.f32 %v94_v14, %v89_v15 }
  0x9d   :  { %v97_v17 = vmax.f32 %v96_v16, 0.0 }
  0x9f   :  { %98 = vst [vmem:[%s189_s3] sm:$0xff] %v97_v17 }

</bundles_post_ra>
